<compile_context>
chip_gen: v7x
topology: tpu7x:2x2x1
jax: 0.10.0
libtpu: 0.0.40
codegen_flags: <defaults>
</compile_context>

<pallas_src>
from typing import NamedTuple

import jax
import jax.numpy as jnp
from jax.experimental import pallas as pl
from jax.experimental.pallas import tpu as pltpu


def _round_up(x: int, m: int) -> int:
    return (x + m - 1) // m * m


def _cdiv(a: int, b: int) -> int:
    return (a + b - 1) // b


def _vmem_budget_bytes() -> int:
    """Generation-aware usable-VMEM cap (leave ~1/8 headroom for the compiler)."""
    try:
        cap = int(pltpu.get_tpu_info().vmem_capacity_bytes)
    except Exception:
        cap = 64 << 20  # conservative fallback: v7x per-TensorCore VMEM
    return cap - cap // 8  # 128 MiB -> 112 MiB (v5e/v6e), 64 MiB -> 56 MiB (v7x)


class FFNParams(NamedTuple):
    w1: jax.Array   # (c_pad, h_pad), compute dtype, zero-padded
    b1: jax.Array   # (1, h_pad),     compute dtype, zero-padded
    w2: jax.Array   # (h_pad, c_pad), compute dtype, zero-padded
    b2: jax.Array   # (1, c_pad),     float32,       zero-padded
    n_embd: int
    hidden: int
    tile_h: int


def prepare_ffn_params(w1, b1, w2, b2, *, compute_dtype=jnp.bfloat16, tile_h=256):
    """Cast + lane-pad the FFN weights ONCE (keep the result; reuse per call)."""
    C, H = w1.shape
    c_pad = _round_up(C, 128)
    th = _round_up(min(int(tile_h), _round_up(H, 128)), 128)
    h_pad = _round_up(H, th)  # explicit zero pad on the reduction axis -> exact math
    w1p = jnp.pad(jnp.asarray(w1, compute_dtype), ((0, c_pad - C), (0, h_pad - H)))
    b1p = jnp.pad(jnp.asarray(b1, compute_dtype).reshape(1, H), ((0, 0), (0, h_pad - H)))
    w2p = jnp.pad(jnp.asarray(w2, compute_dtype), ((0, h_pad - H), (0, c_pad - C)))
    b2p = jnp.pad(jnp.asarray(b2, jnp.float32).reshape(1, C), ((0, 0), (0, c_pad - C)))
    return FFNParams(w1p, b1p, w2p, b2p, C, H, th)


def ffn_kernel(x_ref, w1_ref, b1_ref, w2_ref, b2_ref, o_ref, acc_ref):
    # x_ref:  (TM, Cp)   w1_ref: (Cp, TH)  b1_ref: (1, TH)   [compute dtype]
    # w2_ref: (TH, Cp)   b2_ref: (1, Cp)   [f32]
    # o_ref:  (TM, Cp)   acc_ref: (TM, Cp) [f32 scratch, resident across h]
    h_idx = pl.program_id(1)

    # First matmul on this hidden slice: (TM, Cp) @ (Cp, TH) -> f32 on the MXU.
    h = jnp.dot(x_ref[...], w1_ref[...], preferred_element_type=jnp.float32)
    # Bias + ReLU in the compute dtype (bf16 on the default path halves the
    # vreg/spill footprint of the (TM, TH) intermediate; exact on the f32 path).
    h = jnp.maximum(h.astype(b1_ref.dtype) + b1_ref[...], 0)
    partial = jnp.dot(h.astype(w2_ref.dtype), w2_ref[...],
                      preferred_element_type=jnp.float32)

    @pl.when(h_idx == 0)
    def _init():
        # Fold b2 into the first partial sum (no separate +b2 pass, no zero-init).
        acc_ref[...] = partial + b2_ref[...]

    @pl.when(h_idx > 0)
    def _accum():
        acc_ref[...] += partial

    @pl.when(h_idx == pl.num_programs(1) - 1)
    def _finalize():
        # Dropout == identity in eval mode.
        o_ref[...] = acc_ref[...].astype(o_ref.dtype)


def feed_forward(x, params: FFNParams, *, tile_m=None):
    """x: (B, T, C) -> (B, T, C). Fused Linear->ReLU->Linear (eval-mode dropout)."""
    B, T, C = x.shape
    assert C == params.n_embd, "n_embd mismatch between x and prepared params"
    M = B * T
    out_dtype = x.dtype

    cdt = jnp.dtype(params.w1.dtype)
    odt = jnp.dtype(out_dtype)
    c_pad, h_pad = params.w1.shape
    th = params.tile_h
    grid_h = h_pad // th

    # Pad tokens only to the sublane granule; the grid uses cdiv for the rest.
    m_pad = _round_up(M, 8)

    vmem_cap = _vmem_budget_bytes()

    def vmem_est(tm):
        return int(
            2 * (tm * c_pad * cdt.itemsize       # x tile (double buffered)
                 + c_pad * th * cdt.itemsize     # w1 slice
                 + th * c_pad * cdt.itemsize     # w2 slice
                 + th * cdt.itemsize             # b1 slice
                 + c_pad * 4                     # b2
                 + tm * c_pad * odt.itemsize)    # out tile
            + tm * c_pad * 4                     # f32 accumulator scratch
            + tm * th * 4                        # f32 (TM, TH) intermediate
            + tm * th * cdt.itemsize             # its compute-dtype copy
        )

    # --- token-tile selection -------------------------------------------------
    if tile_m is None:
        # ~680 FLOPs/byte needed on v6e, ~620 on v7x -> target TM of 768-1024.
        tm = 1024 if vmem_cap > (64 << 20) else 768
        while tm > 256 and vmem_est(tm) > vmem_cap:
            tm -= 256
    else:
        tm = max(8, _round_up(int(tile_m), 8))
    tm = _round_up(min(tm, m_pad), 8)
    grid_m = _cdiv(m_pad, tm)

    # Keep at least two token tiles when there is enough work so both v7x
    # TensorCores get a share of the "parallel" axis (harmless elsewhere).
    if grid_m == 1 and m_pad >= 512:
        tm = _round_up(_cdiv(m_pad, 2), 8)
        grid_m = _cdiv(m_pad, tm)

    vmem_limit = int(max(min(vmem_est(tm) + (vmem_est(tm) >> 2) + (4 << 20),
                             vmem_cap), 32 << 20))

    # --- activation padding (weights are already prepared) --------------------
    x2 = jnp.pad(x.reshape(M, C).astype(cdt), ((0, m_pad - M), (0, c_pad - C)))

    cost = pl.CostEstimate(
        flops=int(4 * grid_m * tm * c_pad * h_pad),     # two matmuls
        transcendentals=0,
        bytes_accessed=int(
            m_pad * c_pad * cdt.itemsize
            + grid_m * 2 * h_pad * c_pad * cdt.itemsize
            + h_pad * cdt.itemsize + c_pad * 4
            + m_pad * c_pad * odt.itemsize
        ),
    )

    out = pl.pallas_call(
        ffn_kernel,
        out_shape=jax.ShapeDtypeStruct((m_pad, c_pad), out_dtype),
        grid_spec=pltpu.PrefetchScalarGridSpec(
            num_scalar_prefetch=0,
            grid=(grid_m, grid_h),  # reduction axis (hidden) last
            in_specs=[
                pl.BlockSpec((tm, c_pad), lambda i, h: (i, 0)),      # x
                pl.BlockSpec((c_pad, th), lambda i, h: (0, h)),      # w1
                pl.BlockSpec((1, th), lambda i, h: (0, h)),          # b1
                pl.BlockSpec((th, c_pad), lambda i, h: (h, 0)),      # w2
                pl.BlockSpec((1, c_pad), lambda i, h: (0, 0)),       # b2
            ],
            out_specs=pl.BlockSpec((tm, c_pad), lambda i, h: (i, 0)),
            scratch_shapes=[pltpu.VMEM((tm, c_pad), jnp.float32)],
        ),
        compiler_params=pltpu.CompilerParams(
            dimension_semantics=("parallel", "arbitrary"),
            vmem_limit_bytes=vmem_limit,
        ),
        cost_estimate=cost,
    )(x2, params.w1, params.b1, params.w2, params.b2)

    return out[:M, :C].reshape(B, T, C)


def init_params(key, n_embd, dtype=jnp.float32):
    """Deterministic init mimicking nn.Linear default (uniform(-1/sqrt(fan_in)))."""
    k1, k2, k3, k4 = jax.random.split(key, 4)
    hidden = 4 * n_embd
    bound1 = 1.0 / jnp.sqrt(n_embd)
    bound2 = 1.0 / jnp.sqrt(hidden)
    w1 = jax.random.uniform(k1, (n_embd, hidden), dtype, -bound1, bound1)
    b1 = jax.random.uniform(k2, (hidden,), dtype, -bound1, bound1)
    w2 = jax.random.uniform(k3, (hidden, n_embd), dtype, -bound2, bound2)
    b2 = jax.random.uniform(k4, (n_embd,), dtype, -bound2, bound2)
    return w1, b1, w2, b2


if __name__ == "__main__":
    key = jax.random.PRNGKey(0)
    kx, kp = jax.random.split(key)

    B, T, C = 2, 8, 32  # batch, seq, n_embd
    x = jax.random.normal(kx, (B, T, C), dtype=jnp.float32)
    w1, b1, w2, b2 = init_params(kp, C)

    # f32 compute path: must match the f32 reference tightly.
    params_f32 = prepare_ffn_params(w1, b1, w2, b2, compute_dtype=jnp.float32)
    y_f32 = jax.block_until_ready(feed_forward(x, params_f32))
    ref_f32 = jnp.maximum(x @ w1 + b1, 0.0) @ w2 + b2
    assert y_f32.shape == (B, T, C)
    assert jnp.allclose(y_f32, ref_f32, atol=1e-5, rtol=1e-5)

    # Default bf16-operand / f32-accumulate path: compare against an identically
    # quantized pure-JAX reference.
    params_bf16 = prepare_ffn_params(w1, b1, w2, b2)  # bf16, prepared once
    y_bf16 = jax.block_until_ready(feed_forward(x, params_bf16))
    x2d = x.reshape(-1, C)
    h_ref = jnp.dot(x2d.astype(jnp.bfloat16), w1.astype(jnp.bfloat16),
                    preferred_element_type=jnp.float32)
    h_ref = jnp.maximum(h_ref.astype(jnp.bfloat16) + b1.astype(jnp.bfloat16), 0)
    ref_bf16 = (jnp.dot(h_ref, w2.astype(jnp.bfloat16),
                        preferred_element_type=jnp.float32)
                + b2.astype(jnp.float32)).reshape(B, T, C)
    assert jnp.allclose(y_bf16, ref_bf16, atol=2e-3, rtol=2e-3)
    assert jnp.allclose(y_bf16, ref_f32, atol=5e-2, rtol=5e-2)

    print("KERNEL_OK")
</pallas_src>

<mosaic_0001>
module attributes {stable_mosaic.version = 11 : i64} {
  func.func @ffn_kernel(%arg0: i32, %arg1: i32, %arg2: memref<16x128xf32, #tpu.memory_space<vmem>>, %arg3: memref<128x128xf32, #tpu.memory_space<vmem>>, %arg4: memref<1x128xf32, #tpu.memory_space<vmem>>, %arg5: memref<128x128xf32, #tpu.memory_space<vmem>>, %arg6: memref<1x128xf32, #tpu.memory_space<vmem>>, %arg7: memref<16x128xf32, #tpu.memory_space<vmem>>, %arg8: memref<16x128xf32, #tpu.memory_space<vmem>>) attributes {dimension_semantics = [#tpu.dimension_semantics<parallel>, #tpu.dimension_semantics<arbitrary>], iteration_bounds = array<i64: 1, 1>, scalar_prefetch = 0 : i64, scratch_operands = 1 : i64, tpu.core_type = #tpu.core_type<tc>, window_params = [{transform_indices = @transform_0, window_bounds = array<i64: 16, 128>}, {transform_indices = @transform_1, window_bounds = array<i64: 128, 128>}, {transform_indices = @transform_2, window_bounds = array<i64: 1, 128>}, {transform_indices = @transform_3, window_bounds = array<i64: 128, 128>}, {pipeline_mode = #tpu.pipeline_mode<synchronous>, transform_indices = @transform_4, window_bounds = array<i64: 1, 128>}, {transform_indices = @transform_5, window_bounds = array<i64: 16, 128>}]} {
    %c0 = arith.constant 0 : index
    %c0_0 = arith.constant 0 : index
    %0 = vector.load %arg2[%c0, %c0_0] : memref<16x128xf32, #tpu.memory_space<vmem>>, vector<16x128xf32>
    %c0_1 = arith.constant 0 : index
    %c0_2 = arith.constant 0 : index
    %1 = vector.load %arg3[%c0_1, %c0_2] : memref<128x128xf32, #tpu.memory_space<vmem>>, vector<128x128xf32>
    %cst = arith.constant dense<0.000000e+00> : vector<16x128xf32>
    %2 = tpu.matmul %0, %1, %cst {dimension_numbers = #tpu.dot_dimension_numbers<[1], [0], [0], [1], [0, 0, 1, 1], [], []>} : vector<16x128xf32>, vector<128x128xf32>, vector<16x128xf32> -> vector<16x128xf32>
    %c0_3 = arith.constant 0 : index
    %c0_4 = arith.constant 0 : index
    %3 = vector.load %arg4[%c0_3, %c0_4] : memref<1x128xf32, #tpu.memory_space<vmem>>, vector<1x128xf32>
    %4 = vector.broadcast %3 : vector<1x128xf32> to vector<16x128xf32>
    %5 = arith.addf %2, %4 : vector<16x128xf32>
    %cst_5 = arith.constant 0.000000e+00 : f32
    %6 = vector.broadcast %cst_5 : f32 to vector<16x128xf32>
    %7 = arith.maximumf %5, %6 : vector<16x128xf32>
    %c0_6 = arith.constant 0 : index
    %c0_7 = arith.constant 0 : index
    %8 = vector.load %arg5[%c0_6, %c0_7] : memref<128x128xf32, #tpu.memory_space<vmem>>, vector<128x128xf32>
    %cst_8 = arith.constant dense<0.000000e+00> : vector<16x128xf32>
    %9 = tpu.matmul %7, %8, %cst_8 {dimension_numbers = #tpu.dot_dimension_numbers<[1], [0], [0], [1], [0, 0, 1, 1], [], []>} : vector<16x128xf32>, vector<128x128xf32>, vector<16x128xf32> -> vector<16x128xf32>
    %c0_i32 = arith.constant 0 : i32
    %10 = arith.cmpi eq, %arg1, %c0_i32 : i32
    %11 = arith.extui %10 : i1 to i32
    %c0_i32_9 = arith.constant 0 : i32
    %12 = arith.cmpi ne, %11, %c0_i32_9 : i32
    scf.if %12 {
      %c0_14 = arith.constant 0 : index
      %c0_15 = arith.constant 0 : index
      %19 = vector.load %arg6[%c0_14, %c0_15] : memref<1x128xf32, #tpu.memory_space<vmem>>, vector<1x128xf32>
      %20 = vector.broadcast %19 : vector<1x128xf32> to vector<16x128xf32>
      %21 = arith.addf %9, %20 : vector<16x128xf32>
      %c0_16 = arith.constant 0 : index
      %c0_17 = arith.constant 0 : index
      %22 = vector.load %arg8[%c0_16, %c0_17] : memref<16x128xf32, #tpu.memory_space<vmem>>, vector<16x128xf32>
      tpu.vector_store %arg8[%c0_16, %c0_17], %21 {strides = array<i32>} : memref<16x128xf32, #tpu.memory_space<vmem>>, vector<16x128xf32>,
    } else {
    }
    %c0_i32_10 = arith.constant 0 : i32
    %13 = arith.cmpi sgt, %arg1, %c0_i32_10 : i32
    %14 = arith.extui %13 : i1 to i32
    %c0_i32_11 = arith.constant 0 : i32
    %15 = arith.cmpi ne, %14, %c0_i32_11 : i32
    scf.if %15 {
      %c0_14 = arith.constant 0 : index
      %c0_15 = arith.constant 0 : index
      %19 = vector.load %arg8[%c0_14, %c0_15] : memref<16x128xf32, #tpu.memory_space<vmem>>, vector<16x128xf32>
      %20 = arith.addf %19, %9 : vector<16x128xf32>
      %c0_16 = arith.constant 0 : index
      %c0_17 = arith.constant 0 : index
      %21 = vector.load %arg8[%c0_16, %c0_17] : memref<16x128xf32, #tpu.memory_space<vmem>>, vector<16x128xf32>
      tpu.vector_store %arg8[%c0_16, %c0_17], %20 {strides = array<i32>} : memref<16x128xf32, #tpu.memory_space<vmem>>, vector<16x128xf32>,
    } else {
    }
    %c0_i32_12 = arith.constant 0 : i32
    %16 = arith.cmpi eq, %arg1, %c0_i32_12 : i32
    %17 = arith.extui %16 : i1 to i32
    %c0_i32_13 = arith.constant 0 : i32
    %18 = arith.cmpi ne, %17, %c0_i32_13 : i32
    scf.if %18 {
      %c0_14 = arith.constant 0 : index
      %c0_15 = arith.constant 0 : index
      %19 = vector.load %arg8[%c0_14, %c0_15] : memref<16x128xf32, #tpu.memory_space<vmem>>, vector<16x128xf32>
      %c0_16 = arith.constant 0 : index
      %c0_17 = arith.constant 0 : index
      %20 = vector.load %arg7[%c0_16, %c0_17] : memref<16x128xf32, #tpu.memory_space<vmem>>, vector<16x128xf32>
      tpu.vector_store %arg7[%c0_16, %c0_17], %19 {strides = array<i32>} : memref<16x128xf32, #tpu.memory_space<vmem>>, vector<16x128xf32>,
    } else {
    }
    return
  }
  func.func @transform_0(%arg0: i32, %arg1: i32) -> (i32, i32) {
    %c0_i32 = arith.constant 0 : i32
    %c0_i32_0 = arith.constant 0 : i32
    return %arg0, %c0_i32 : i32, i32
  }
  func.func @transform_1(%arg0: i32, %arg1: i32) -> (i32, i32) {
    %c0_i32 = arith.constant 0 : i32
    %c0_i32_0 = arith.constant 0 : i32
    return %c0_i32, %arg1 : i32, i32
  }
  func.func @transform_2(%arg0: i32, %arg1: i32) -> (i32, i32) {
    %c0_i32 = arith.constant 0 : i32
    %c0_i32_0 = arith.constant 0 : i32
    return %c0_i32, %arg1 : i32, i32
  }
  func.func @transform_3(%arg0: i32, %arg1: i32) -> (i32, i32) {
    %c0_i32 = arith.constant 0 : i32
    %c0_i32_0 = arith.constant 0 : i32
    return %arg1, %c0_i32 : i32, i32
  }
  func.func @transform_4(%arg0: i32, %arg1: i32) -> (i32, i32) {
    %c0_i32 = arith.constant 0 : i32
    %c0_i32_0 = arith.constant 0 : i32
    %c0_i32_1 = arith.constant 0 : i32
    return %c0_i32, %c0_i32_0 : i32, i32
  }
  func.func @transform_5(%arg0: i32, %arg1: i32) -> (i32, i32) {
    %c0_i32 = arith.constant 0 : i32
    %c0_i32_0 = arith.constant 0 : i32
    return %arg0, %c0_i32 : i32, i32
  }
}

</mosaic_0001>

<bundles_post_ra>
// kernel: tpu_custom_call.1
= control target key start
LH: loop header
LB: loop body
LE: loop exit
PB: predicated region body
PF: predicated region fallthrough
CT: control target
= control target key end

     0   :  { %10 = vsyncpa [#allocation4], 0  ;;  %s686_s0 = inlined_call_operand.hbm [shape: f32[16,128], index: 0, kind: input, shape index: {}]   ;;  %s687_s1 = inlined_call_operand.hbm [shape: f32[128,128], index: 1, kind: input, shape index: {}]   ;;  %s688_s2 = inlined_call_operand.vmem [shape: f32[1,128], index: 2, kind: input, shape index: {}]   ;;  %s689_s3 = inlined_call_operand.hbm [shape: f32[128,128], index: 3, kind: input, shape index: {}]   ;;  %s690_s4 = inlined_call_operand.vmem [shape: f32[1,128], index: 4, kind: input, shape index: {}]   ;;  %s691_s5 = inlined_call_operand.hbm [shape: f32[16,128], index: 5, kind: output, shape index: {}]  }
   0x1   :  { %11 = vsyncpa [#allocation7], 0 }
   0x2   :  { %12 = vsyncpa [#allocation5], 0  ;;  %s577_s18 = smov [#allocation6]   ;;  %s578_s20 = smov [#allocation3]  }
   0x3   :  { %s30_s19 = sshll.u32 %s577_s18, 4  ;;  %s18_s21 = sshll.u32 %s578_s20, 4  ;;  %s31_s19 = int_to_ptr.vmem [resolvable:$true] %s30_s19  ;;  %s613_s21 = int_to_ptr.vmem [resolvable:$true] %s18_s21 }
   0x4   :  { %s483_s24 = scalar_lea.hbm %s687_s1, 2048 }
   0x5   :  { %p484_p0 = scmp.ne.s32.totalorder %s687_s1, %s483_s24  ;;  %p487_p1 = scmp.lt.u32.totalorder %s483_s24, %s687_s1 }
   0x7   :  { %p489_p2 = pnand %p487_p1, %p484_p0 }
   0x9   :  { %492 = shalt.err (!%p489_p2)
}
   0xa   :  { %s493_s29 = scalar_lea.vmem %s31_s19, 2048  ;;  %p498_p4 = scmp.lt.s32.totalorder %s31_s19, %s31_s19 }
   0xb   :  { %p494_p3 = scmp.ne.s32.totalorder %s31_s19, %s493_s29  ;;  %p499_p5 = scmp.lt.s32.totalorder %s493_s29, %s493_s29 }
   0xd   :  { %p500_p6 = por %p499_p5, %p498_p4 }
   0xf   :  { %p501_p7 = pnand %p500_p6, %p494_p3 }
  0x11   :  { %504 = shalt.err (!%p501_p7)
}
  0x12   :  { %s579_s30 = smov 128   ;;  %s580_s6 = smov 8  }
  0x13   :  { %36 = dma.hbm_to_vmem [thread:$0]  %s687_s1, 2048, %s31_s19, [#allocation7], %s579_s30, %s579_s30, %s580_s6  }
  0x14   :  { %s505_s11 = scalar_lea.hbm %s686_s0, 256 }
  0x15   :  { %p506_p8 = scmp.ne.s32.totalorder %s686_s0, %s505_s11  ;;  %p509_p9 = scmp.lt.u32.totalorder %s505_s11, %s686_s0 }
  0x17   :  { %p511_p10 = pnand %p509_p9, %p506_p8 }
  0x19   :  { %514 = shalt.err (!%p511_p10)
}
  0x1a   :  { %s515_s16 = scalar_lea.vmem %s613_s21, 256  ;;  %p520_p12 = scmp.lt.s32.totalorder %s613_s21, %s613_s21 }
  0x1b   :  { %p516_p11 = scmp.ne.s32.totalorder %s613_s21, %s515_s16  ;;  %p521_p13 = scmp.lt.s32.totalorder %s515_s16, %s515_s16 }
  0x1d   :  { %p522_p0 = por %p521_p13, %p520_p12 }
  0x1f   :  { %p523_p1 = pnand %p522_p0, %p516_p11 }
  0x21   :  { %526 = shalt.err (!%p523_p1)
}
  0x22   :  { %24 = dma.hbm_to_vmem [thread:$0]  %s686_s0, 256, %s613_s21, [#allocation4], %s579_s30, %s579_s30, %s580_s6  }
  0x23   :  { %s581_s18 = smov [#allocation8]   ;;  %s527_s23 = scalar_lea.hbm %s689_s3, 2048 }
  0x24   :  { %s44_s19 = sshll.u32 %s581_s18, 4  ;;  %p528_p2 = scmp.ne.s32.totalorder %s689_s3, %s527_s23  ;;  %s45_s19 = int_to_ptr.vmem [resolvable:$true] %s44_s19 }
  0x25   :  { %p531_p3 = scmp.lt.u32.totalorder %s527_s23, %s689_s3 }
  0x27   :  { %p533_p4 = pnand %p531_p3, %p528_p2 }
  0x29   :  { %536 = shalt.err (!%p533_p4)
}
  0x2a   :  { %s537_s28 = scalar_lea.vmem %s45_s19, 2048  ;;  %p542_p6 = scmp.lt.s32.totalorder %s45_s19, %s45_s19 }
  0x2b   :  { %p538_p5 = scmp.ne.s32.totalorder %s45_s19, %s537_s28  ;;  %p543_p7 = scmp.lt.s32.totalorder %s537_s28, %s537_s28 }
  0x2d   :  { %p544_p8 = por %p543_p7, %p542_p6 }
  0x2f   :  { %p545_p9 = pnand %p544_p8, %p538_p5 }
  0x31   :  { %548 = shalt.err (!%p545_p9)
}
  0x32   :  { %50 = dma.hbm_to_vmem [thread:$0]  %s689_s3, 2048, %s45_s19, [#allocation7], %s579_s30, %s579_s30, %s580_s6  }
  0x33   :  { %571 = dma.done.wait [#allocation4], 256  }
  0x34   :  { %572 = vsyncadd [#allocation4], 4294967040 }
  0x35   :  { %573 = dma.done.wait [#allocation7], 4096  }
  0x36   :  { %574 = vsyncadd [#allocation7], 4294963200  ;;  %v64_v0 = vld [vmem:[#allocation6] sm:$0xff]  ;;  %v65_v1 = vld [vmem:[#allocation6 + $0x8] sm:$0xff]  ;;  %s582_s9 = smov [#allocation9]  }
  0x37   :  { %v66_v2 = vld [vmem:[#allocation6 + $0x10] sm:$0xff]  ;;  %v413_v3 = vpack.c.bf16 %v65_v1, %v64_v0  ;;  %v67_v4 = vld [vmem:[#allocation6 + $0x18] sm:$0xff]  ;;  %v68_v6 = vld [vmem:[#allocation6 + $0x20] sm:$0xff]  ;;  %s292_s10 = sshll.u32 %s582_s9, 4  ;;  %s293_s10 = int_to_ptr.vmem [resolvable:$true] %s292_s10 }
  0x38   :  { %v417_v5 = vpack.c.bf16 %v67_v4, %v66_v2  ;;  %v69_v7 = vld [vmem:[#allocation6 + $0x28] sm:$0xff]  ;;  %v70_v9 = vld [vmem:[#allocation6 + $0x30] sm:$0xff]  ;;  %v71_v10 = vld [vmem:[#allocation6 + $0x38] sm:$0xff]  ;;  %p554_p11 = scmp.lt.s32.totalorder %s293_s10, %s293_s10 }
  0x39   :  { %414 = vmatprep.subr.bf16.mxu0 %v413_v3  ;;  %v421_v8 = vpack.c.bf16 %v69_v7, %v68_v6  ;;  %v62_v11 = vld [vmem:[#allocation3] sm:$0xff]  ;;  %v164_v12 = vld [vmem:[#allocation8] sm:$0xff]  ;;  %v165_v13 = vld [vmem:[#allocation8 + $0x8] sm:$0xff]  ;;  %v425_v20 = vpack.c.bf16 %v71_v10, %v70_v9 }
  0x3a   :  { %416 = vmatpush3.bf16.msra.mxu0 %v413_v3  ;;  %375 = vmatprep.mubr.f32.mxu0 %v62_v11  ;;  %v166_v14 = vld [vmem:[#allocation8 + $0x10] sm:$0xff]  ;;  %v445_v15 = vpack.c.bf16 %v165_v13, %v164_v12  ;;  %v167_v16 = vld [vmem:[#allocation8 + $0x18] sm:$0xff]  ;;  %v168_v18 = vld [vmem:[#allocation8 + $0x20] sm:$0xff] }
  0x3b   :  { %418 = vmatprep.subr.bf16.mxu0 %v417_v5  ;;  %v449_v17 = vpack.c.bf16 %v167_v16, %v166_v14  ;;  %v169_v19 = vld [vmem:[#allocation8 + $0x28] sm:$0xff]  ;;  %v72_v21 = vld [vmem:[#allocation6 + $0x40] sm:$0xff]  ;;  %v170_v24 = vld [vmem:[#allocation8 + $0x30] sm:$0xff] }
  0x3c   :  { %446 = vmatprep.subr.bf16.mxu1 %v445_v15  ;;  %v73_v22 = vld [vmem:[#allocation6 + $0x48] sm:$0xff]  ;;  %v453_v23 = vpack.c.bf16 %v169_v19, %v168_v18  ;;  %v171_v25 = vld [vmem:[#allocation8 + $0x38] sm:$0xff]  ;;  %v74_v27 = vld [vmem:[#allocation6 + $0x50] sm:$0xff] }
  0x3d   :  { %448 = vmatpush3.bf16.msra.mxu1 %v445_v15  ;;  %v429_v26 = vpack.c.bf16 %v73_v22, %v72_v21  ;;  %v75_v28 = vld [vmem:[#allocation6 + $0x58] sm:$0xff]  ;;  %v457_v29 = vpack.c.bf16 %v171_v25, %v170_v24  ;;  %v172_v30 = vld [vmem:[#allocation8 + $0x40] sm:$0xff]  ;;  %v173_v31 = vld [vmem:[#allocation8 + $0x48] sm:$0xff] }
  0x3e   :  { %420 = vmatpush3.bf16.msra.mxu0 %v417_v5  ;;  %450 = vmatprep.subr.bf16.mxu1 %v449_v17  ;;  %v433_v32 = vpack.c.bf16 %v75_v28, %v74_v27  ;;  %v76_v33 = vld [vmem:[#allocation6 + $0x60] sm:$0xff]  ;;  %v77_v34 = vld [vmem:[#allocation6 + $0x68] sm:$0xff]  ;;  %v461_v35 = vpack.c.bf16 %v173_v31, %v172_v30  ;;  %v174_v36 = vld [vmem:[#allocation8 + $0x50] sm:$0xff] }
  0x3f   :  { %422 = vmatprep.subr.bf16.mxu0 %v421_v8  ;;  %v175_v37 = vld [vmem:[#allocation8 + $0x58] sm:$0xff]  ;;  %v437_v38 = vpack.c.bf16 %v77_v34, %v76_v33  ;;  %v78_v39 = vld [vmem:[#allocation6 + $0x70] sm:$0xff]  ;;  %v176_v42 = vld [vmem:[#allocation8 + $0x60] sm:$0xff] }
  0x40   :  { %v79_v40 = vld [vmem:[#allocation6 + $0x78] sm:$0xff]  ;;  %v465_v41 = vpack.c.bf16 %v175_v37, %v174_v36  ;;  %v177_v43 = vld [vmem:[#allocation8 + $0x68] sm:$0xff]  ;;  %v178_v47 = vld [vmem:[#allocation8 + $0x70] sm:$0xff] }
  0x41   :  { %452 = vmatpush3.bf16.msra.mxu1 %v449_v17  ;;  %v441_v44 = vpack.c.bf16 %v79_v40, %v78_v39  ;;  %v469_v45 = vpack.c.bf16 %v177_v43, %v176_v42  ;;  %v63_v46 = vld [vmem:[#allocation3 + $0x8] sm:$0xff]  ;;  %v305_v50 = vld [vmem:[%s688_s2] ss:$0 sm:$0xff]  ;;  %s549_s2 = scalar_lea.vmem %s293_s10, 256 }
  0x42   :  { %424 = vmatpush3.bf16.msra.mxu0 %v421_v8  ;;  %454 = vmatprep.subr.bf16.mxu1 %v453_v23  ;;  %v179_v48 = vld [vmem:[#allocation8 + $0x78] sm:$0xff]  ;;  %v306_v57 = vld [vmem:[%s690_s4] ss:$0 sm:$0xff]  ;;  %p550_p10 = scmp.ne.s32.totalorder %s293_s10, %s549_s2  ;;  %p555_p12 = scmp.lt.s32.totalorder %s549_s2, %s549_s2 }
  0x43   :  { %426 = vmatprep.subr.bf16.mxu0 %v425_v20  ;;  %v473_v49 = vpack.c.bf16 %v179_v48, %v178_v47 }
  0x44   :  { %p556_p13 = por %p555_p12, %p554_p11 }
  0x45   :  { %456 = vmatpush3.bf16.msra.mxu1 %v453_v23 }
  0x46   :  { %428 = vmatpush3.bf16.msra.mxu0 %v425_v20  ;;  %458 = vmatprep.subr.bf16.mxu1 %v457_v29  ;;  %p557_p0 = pnand %p556_p13, %p550_p10 }
  0x47   :  { %430 = vmatprep.subr.bf16.mxu0 %v429_v26 }
  0x49   :  { %460 = vmatpush3.bf16.msra.mxu1 %v457_v29 }
  0x4a   :  { %432 = vmatpush3.bf16.msra.mxu0 %v429_v26  ;;  %462 = vmatprep.subr.bf16.mxu1 %v461_v35 }
  0x4b   :  { %434 = vmatprep.subr.bf16.mxu0 %v433_v32 }
  0x4d   :  { %464 = vmatpush3.bf16.msra.mxu1 %v461_v35 }
  0x4e   :  { %436 = vmatpush3.bf16.msra.mxu0 %v433_v32  ;;  %466 = vmatprep.subr.bf16.mxu1 %v465_v41 }
  0x4f   :  { %438 = vmatprep.subr.bf16.mxu0 %v437_v38 }
  0x51   :  { %468 = vmatpush3.bf16.msra.mxu1 %v465_v41 }
  0x52   :  { %440 = vmatpush3.bf16.msra.mxu0 %v437_v38  ;;  %470 = vmatprep.subr.bf16.mxu1 %v469_v45 }
  0x53   :  { %442 = vmatprep.subr.bf16.mxu0 %v441_v44 }
  0x55   :  { %472 = vmatpush3.bf16.msra.mxu1 %v469_v45 }
  0x56   :  { %444 = vmatpush3.bf16.msra.mxu0 %v441_v44  ;;  %474 = vmatprep.subr.bf16.mxu1 %v473_v49 }
  0x59   :  { %376 = vmatmul.mubr.f32.vlgmr.msra.gmra.mrb[0].mxu0 %v63_v46  ;;  %476 = vmatpush3.bf16.msra.mxu1 %v473_v49 }
 0x12c   :  { %v377_v51 = vpop.f32.mrb[0].mxu0 }
 0x12d   :  { %v159_v52 = vadd.f32 %v377_v51, %v305_v50  ;;  %v153_v53 = vpop.f32.mrb[1].mxu0 }
 0x12e   :  { %v154_v54 = vadd.f32 %v305_v50, %v153_v53 }
 0x12f   :  { %v163_v56 = vmax.f32 %v159_v52, 0.0 }
 0x130   :  { %v162_v55 = vmax.f32 %v154_v54, 0.0 }
 0x132   :  { %410 = vmatprep.mubr.f32.mxu1 %v162_v55 }
 0x133   :  { %411 = vmatmul.mubr.f32.vlgmr.msra.gmra.mrb[0].mxu1 %v163_v56 }
 0x206   :  { %v412_v58 = vpop.f32.mrb[0].mxu1 }
 0x207   :  { %v267_v59 = vadd.f32 %v412_v58, %v306_v57  ;;  %v246_v60 = vpop.f32.mrb[1].mxu1 }
 0x208   :  { %v266_v61 = vadd.f32 %v306_v57, %v246_v60 }
 0x209   :  { %286 = vst [vmem:[#allocation9 + $0x8] sm:$0xff] %v267_v59 }
 0x20a   :  { %285 = vst [vmem:[#allocation9] sm:$0xff] %v266_v61 }
 0x20b   :  { %560 = shalt.err (!%p557_p0)
}
 0x20c   :  { %s561_s4 = scalar_lea.hbm %s691_s5, 256 }
 0x20d   :  { %p562_p1 = scmp.ne.s32.totalorder %s691_s5, %s561_s4  ;;  %p565_p2 = scmp.lt.u32.totalorder %s561_s4, %s691_s5 }
 0x20f   :  { %p567_p3 = pnand %p565_p2, %p562_p1 }
 0x211   :  { %570 = shalt.err (!%p567_p3)
}
 0x212   :  { %298 = dma.vmem_to_hbm [thread:$0]  %s293_s10, 256, %s691_s5, [#allocation5], %s579_s30, %s579_s30, %s580_s6  }
 0x213   :  { %575 = dma.done.wait [#allocation5], 256  }
 0x214   :  { %576 = vsyncadd [#allocation5], 4294967040 }
 0x215   :  { %302 = vsyncpa [#allocation4], 1 }
 0x216   :  { %303 = vsyncpa [#allocation7], 1 }
 0x217   :  { %304 = vsyncpa [#allocation5], 1 }

</bundles_post_ra>
